<compile_context>
chip_gen: v5e
topology: v5e:2x2
jax: 0.10.0
libtpu: 0.0.40
codegen_flags: <defaults>
</compile_context>

<pallas_src>
import functools

import numpy as np
import jax
import jax.numpy as jnp
from jax import lax
from jax.experimental import pallas as pl
from jax.experimental.pallas import tpu as pltpu


# --------------------------------------------------------------------------
# Kernel
# --------------------------------------------------------------------------
def _crop_resize_kernel(bp, x_ref, wy_ref, wxT_ref, out_ref, xw_ref):
    """x_ref: (bp, ih, iw) upper-left crops (or full planes with padded weights)
    wy_ref: (H, ih)   resident height-interp matrix
    wxT_ref:(iw, Wout) resident width-interp matrix (transposed)
    out_ref:(bp, H, Wout)
    xw_ref: (bp, ih, Wout) f32 scratch holding the width-resized planes."""
    _, ih, iw = x_ref.shape
    wout = wxT_ref.shape[1]

    # 1) Width resize batched over every plane in the block: one large-M matmul
    #    with the shared WxT as the stationary RHS (fewer MXU push/pop seqs).
    xw_ref[...] = jnp.dot(
        x_ref[...].astype(jnp.float32).reshape(bp * ih, iw),
        wxT_ref[...],
        preferred_element_type=jnp.float32,
    ).reshape(bp, ih, wout)

    # 2) Height resize per plane; fori_loop keeps only one plane's
    #    intermediates live (no vreg spills from a Python unroll).
    wy = wy_ref[...]
    out_is_int = jnp.issubdtype(out_ref.dtype, jnp.integer)

    def body(p, carry):
        res = jnp.dot(wy, xw_ref[p], preferred_element_type=jnp.float32)
        if out_is_int:            # trace-time branch; round instead of truncate
            res = jnp.rint(res)
        out_ref[p] = res.astype(out_ref.dtype)
        return carry

    lax.fori_loop(0, bp, body, 0, unroll=True)


# --------------------------------------------------------------------------
# Block sizing
# --------------------------------------------------------------------------
_VMEM_LIVE_BUDGET = 16 * 1024 * 1024   # conservative live-block budget (all gens)


def _pick_planes_per_block(num_planes, h, w_out, ih, iw,
                           in_itemsize, out_itemsize, max_bp=16):
    """Largest bp whose double-buffered in/out blocks + f32 scratch + weights
    fit the live-VMEM budget, capped so the grid keeps >= 2 steps (megacore)."""
    per_plane = (2 * ih * iw * in_itemsize       # double-buffered input block
                 + 2 * h * w_out * out_itemsize  # double-buffered output block
                 + ih * w_out * 4)               # f32 width-resize scratch
    weights = 2 * (h * ih + iw * w_out) * 4
    cap = max(1, (_VMEM_LIVE_BUDGET - weights) // max(1, per_plane))
    bp = int(min(max_bp, cap, num_planes))
    if num_planes >= 2:
        bp = min(bp, -(-num_planes // 2))        # keep >= 2 grid steps
    return max(1, bp)


# --------------------------------------------------------------------------
# Pallas wrapper for one (N, C, H, W) tensor
# --------------------------------------------------------------------------
def _resize_planes(x, wy_np, wxT_np, ch, cw):
    """Resize the upper-left (ch, cw) crop of every plane of x back to (H, W)
    with interpolation matrices wy (H, ch) and wxT (cw, W)."""
    n, c, h, w = x.shape
    num_planes = n * c
    xf = x.reshape(num_planes, h, w)

    wy_np = np.asarray(wy_np, np.float32)
    wxT_np = np.asarray(wxT_np, np.float32)

    # --- express the crop -------------------------------------------------
    if ch % 8 == 0 and (cw % 128 == 0 or cw == w):
        # (a) aligned crop -> crop directly in the BlockSpec (reads only ch*cw)
        ih, iw = ch, cw
    else:
        # (b) full-plane block + zero-padded weights (no in-kernel lane slice)
        ih, iw = h, w
        tmp = np.zeros((h, h), np.float32); tmp[:, :ch] = wy_np; wy_np = tmp
        tmp = np.zeros((w, w), np.float32); tmp[:cw, :] = wxT_np; wxT_np = tmp

    # --- lane-dense output stores for large, non-128-multiple W -----------
    w_out = w
    if w >= 128 and w % 128 != 0:
        w_out = ((w + 127) // 128) * 128
        tmp = np.zeros((iw, w_out), np.float32); tmp[:, :w] = wxT_np; wxT_np = tmp

    in_is = np.dtype(x.dtype).itemsize
    out_is = in_is
    bp = _pick_planes_per_block(num_planes, h, w_out, ih, iw, in_is, out_is)
    grid = (pl.cdiv(num_planes, bp),)

    live_bytes = (2 * bp * ih * iw * in_is + 2 * bp * h * w_out * out_is
                  + bp * ih * w_out * 4 + 2 * (h * ih + iw * w_out) * 4)
    vmem_limit = int(min(48 * 1024 * 1024, max(32 * 1024 * 1024, 2 * live_bytes)))

    kernel = functools.partial(_crop_resize_kernel, bp)
    out = pl.pallas_call(
        kernel,
        out_shape=jax.ShapeDtypeStruct((num_planes, h, w_out), x.dtype),
        grid_spec=pltpu.PrefetchScalarGridSpec(
            num_scalar_prefetch=0,
            grid=grid,
            in_specs=[
                pl.BlockSpec((bp, ih, iw), lambda i: (i, 0, 0)),   # crop / plane
                pl.BlockSpec((h, ih), lambda i: (0, 0)),           # Wy  (resident)
                pl.BlockSpec((iw, w_out), lambda i: (0, 0)),       # WxT (resident)
            ],
            out_specs=pl.BlockSpec((bp, h, w_out), lambda i: (i, 0, 0)),
            scratch_shapes=[pltpu.VMEM((bp, ih, w_out), jnp.float32)],
        ),
        compiler_params=pltpu.CompilerParams(
            dimension_semantics=("parallel",),
            vmem_limit_bytes=vmem_limit),
    )(xf, jnp.asarray(wy_np), jnp.asarray(wxT_np))

    if w_out != w:
        out = out[:, :, :w]
    return out.reshape(n, c, h, w)
    # TODO(synk): very large images would additionally benefit from a second
    # grid axis tiling H (Wy blocked along the output rows).


# --------------------------------------------------------------------------
# Host-side (trace-time) interpolation helpers
# --------------------------------------------------------------------------
def _bilinear_weights(out_size, in_size):
    """(out_size, in_size) bilinear interpolation matrix, align_corners=False
    (matches torchvision F.resize / F.interpolate bilinear; antialias is a
    no-op for the upscaling case crop_size <= 1)."""
    i = np.arange(out_size, dtype=np.float64)
    scale = in_size / out_size
    src = np.clip((i + 0.5) * scale - 0.5, 0.0, None)
    x0 = np.minimum(np.floor(src).astype(np.int64), in_size - 1)
    x1 = np.minimum(x0 + 1, in_size - 1)
    w1 = (src - x0).astype(np.float32)
    w0 = (1.0 - w1).astype(np.float32)
    eye = np.eye(in_size, dtype=np.float32)
    return np.asarray(w0[:, None] * eye[x0] + w1[:, None] * eye[x1],
                      dtype=np.float32)


def _nearest_crop_resize(mask, ch, cw):
    """Crop to the upper-left (ch, cw) window and nearest-resize back to (H, W).
    Pure gather (legacy F.interpolate 'nearest': src = floor(i * in/out))."""
    h, w = mask.shape[-2], mask.shape[-1]
    yi = np.minimum(np.floor(np.arange(h) * (ch / h)).astype(np.int64), ch - 1)
    xi = np.minimum(np.floor(np.arange(w) * (cw / w)).astype(np.int64), cw - 1)
    out = jnp.take(mask, jnp.asarray(yi), axis=-2)
    out = jnp.take(out, jnp.asarray(xi), axis=-1)
    return out


# --------------------------------------------------------------------------
# Public wrapper
# --------------------------------------------------------------------------
def upper_left_crop_with_resize_back(image, mask, crop_size):
    """JAX/Pallas equivalent of UpperLeftCropWithResizeBack.forward(image, mask, crop_size)."""
    # TODO(synk): the module's random crop-size sampling (torch.randint on host)
    # is outside the kernel; crop_size must be supplied explicitly here.
    # TODO(synk): antialias only differs for downscaling (crop_size > 1), which
    # the original module never produces; plain bilinear matches torchvision here.
    _, _, h, w = image.shape
    ch = min(h, max(1, int(crop_size * h)))
    cw = min(w, max(1, int(crop_size * w)))

    wy = _bilinear_weights(h, ch)          # (H, ch)
    wxT = _bilinear_weights(w, cw).T       # (cw, W)

    image_out = _resize_planes(image, wy, wxT, ch, cw)
    mask_out = _nearest_crop_resize(mask, ch, cw)
    return image_out, mask_out


if __name__ == "__main__":
    key = jax.random.PRNGKey(0)
    k_img, k_msk = jax.random.split(key)

    # Small NCHW shapes consistent with the module's image/mask inputs.
    image = jax.random.uniform(k_img, (2, 4, 16, 16), dtype=jnp.float32)
    mask = (jax.random.uniform(k_msk, (2, 1, 16, 16)) > 0.5).astype(jnp.float32)
    crop_size = 0.5  # deterministic crop fraction (module would sample it randomly)

    img_out, msk_out = upper_left_crop_with_resize_back(image, mask, crop_size)
    jax.block_until_ready((img_out, msk_out))

    assert img_out.shape == image.shape and img_out.dtype == image.dtype
    assert msk_out.shape == mask.shape and msk_out.dtype == mask.dtype
    # Mask must remain exactly binary after the nearest-neighbor resize.
    assert bool(jnp.all((msk_out == 0.0) | (msk_out == 1.0)))

    # Pure-JAX reference using the same interpolation matrices (checks crop
    # handling, weight padding, tiling and stores of the Pallas path).
    h, w = image.shape[-2:]
    ch = min(h, max(1, int(crop_size * h)))
    cw = min(w, max(1, int(crop_size * w)))
    wy = jnp.asarray(_bilinear_weights(h, ch))
    wxT = jnp.asarray(_bilinear_weights(w, cw).T)
    crop = image[..., :ch, :cw].astype(jnp.float32)
    ref = jnp.einsum('hc,bkcd,dw->bkhw', wy, crop, wxT)
    np.testing.assert_allclose(np.asarray(img_out), np.asarray(ref),
                               rtol=1e-5, atol=1e-5)

    print("KERNEL_OK")
</pallas_src>

<mosaic_0001>
module attributes {stable_mosaic.version = 11 : i64} {
  func.func @_crop_resize_kernel(%arg0: i32, %arg1: memref<4x16x16xf32, #tpu.memory_space<vmem>>, %arg2: memref<16x16xf32, #tpu.memory_space<vmem>>, %arg3: memref<16x16xf32, #tpu.memory_space<vmem>>, %arg4: memref<4x16x16xf32, #tpu.memory_space<vmem>>, %arg5: memref<4x16x16xf32, #tpu.memory_space<vmem>>) attributes {dimension_semantics = [#tpu.dimension_semantics<parallel>], iteration_bounds = array<i64: 2>, scalar_prefetch = 0 : i64, scratch_operands = 1 : i64, tpu.core_type = #tpu.core_type<tc>, window_params = [{transform_indices = @transform_0, window_bounds = array<i64: 4, 16, 16>}, {pipeline_mode = #tpu.pipeline_mode<synchronous>, transform_indices = @transform_1, window_bounds = array<i64: 16, 16>}, {pipeline_mode = #tpu.pipeline_mode<synchronous>, transform_indices = @transform_2, window_bounds = array<i64: 16, 16>}, {transform_indices = @transform_3, window_bounds = array<i64: 4, 16, 16>}]} {
    %c0 = arith.constant 0 : index
    %c0_0 = arith.constant 0 : index
    %c0_1 = arith.constant 0 : index
    %0 = vector.load %arg1[%c0, %c0_0, %c0_1] : memref<4x16x16xf32, #tpu.memory_space<vmem>>, vector<4x16x16xf32>
    %1 = vector.shape_cast %0 : vector<4x16x16xf32> to vector<64x16xf32>
    %c0_2 = arith.constant 0 : index
    %c0_3 = arith.constant 0 : index
    %2 = vector.load %arg3[%c0_2, %c0_3] : memref<16x16xf32, #tpu.memory_space<vmem>>, vector<16x16xf32>
    %cst = arith.constant dense<0.000000e+00> : vector<64x16xf32>
    %3 = tpu.matmul %1, %2, %cst {dimension_numbers = #tpu.dot_dimension_numbers<[1], [0], [0], [1], [0, 0, 1, 1], [], []>} : vector<64x16xf32>, vector<16x16xf32>, vector<64x16xf32> -> vector<64x16xf32>
    %4 = vector.shape_cast %3 : vector<64x16xf32> to vector<4x16x16xf32>
    %c0_4 = arith.constant 0 : index
    %c0_5 = arith.constant 0 : index
    %c0_6 = arith.constant 0 : index
    %5 = vector.load %arg5[%c0_4, %c0_5, %c0_6] : memref<4x16x16xf32, #tpu.memory_space<vmem>>, vector<4x16x16xf32>
    tpu.vector_store %arg5[%c0_4, %c0_5, %c0_6], %4 {strides = array<i32>} : memref<4x16x16xf32, #tpu.memory_space<vmem>>, vector<4x16x16xf32>,
    %c0_7 = arith.constant 0 : index
    %c0_8 = arith.constant 0 : index
    %6 = vector.load %arg2[%c0_7, %c0_8] : memref<16x16xf32, #tpu.memory_space<vmem>>, vector<16x16xf32>
    %c0_i32 = arith.constant 0 : i32
    %7 = arith.index_cast %c0_i32 : i32 to index
    %c0_9 = arith.constant 0 : index
    %c0_10 = arith.constant 0 : index
    %8 = vector.load %arg5[%7, %c0_9, %c0_10] : memref<4x16x16xf32, #tpu.memory_space<vmem>>, vector<1x16x16xf32>
    %9 = vector.shape_cast %8 : vector<1x16x16xf32> to vector<16x16xf32>
    %cst_11 = arith.constant dense<0.000000e+00> : vector<16x16xf32>
    %10 = tpu.matmul %6, %9, %cst_11 {dimension_numbers = #tpu.dot_dimension_numbers<[1], [0], [0], [1], [0, 0, 1, 1], [], []>} : vector<16x16xf32>, vector<16x16xf32>, vector<16x16xf32> -> vector<16x16xf32>
    %11 = arith.index_cast %c0_i32 : i32 to index
    %c0_12 = arith.constant 0 : index
    %c0_13 = arith.constant 0 : index
    %12 = vector.load %arg4[%11, %c0_12, %c0_13] : memref<4x16x16xf32, #tpu.memory_space<vmem>>, vector<1x16x16xf32>
    %13 = vector.shape_cast %12 : vector<1x16x16xf32> to vector<16x16xf32>
    %14 = vector.shape_cast %10 : vector<16x16xf32> to vector<1x16x16xf32>
    tpu.vector_store %arg4[%11, %c0_12, %c0_13], %14 {strides = array<i32>} : memref<4x16x16xf32, #tpu.memory_space<vmem>>, vector<1x16x16xf32>,
    %c1_i32 = arith.constant 1 : i32
    %15 = arith.index_cast %c1_i32 : i32 to index
    %c0_14 = arith.constant 0 : index
    %c0_15 = arith.constant 0 : index
    %16 = vector.load %arg5[%15, %c0_14, %c0_15] : memref<4x16x16xf32, #tpu.memory_space<vmem>>, vector<1x16x16xf32>
    %17 = vector.shape_cast %16 : vector<1x16x16xf32> to vector<16x16xf32>
    %cst_16 = arith.constant dense<0.000000e+00> : vector<16x16xf32>
    %18 = tpu.matmul %6, %17, %cst_16 {dimension_numbers = #tpu.dot_dimension_numbers<[1], [0], [0], [1], [0, 0, 1, 1], [], []>} : vector<16x16xf32>, vector<16x16xf32>, vector<16x16xf32> -> vector<16x16xf32>
    %19 = arith.index_cast %c1_i32 : i32 to index
    %c0_17 = arith.constant 0 : index
    %c0_18 = arith.constant 0 : index
    %20 = vector.load %arg4[%19, %c0_17, %c0_18] : memref<4x16x16xf32, #tpu.memory_space<vmem>>, vector<1x16x16xf32>
    %21 = vector.shape_cast %20 : vector<1x16x16xf32> to vector<16x16xf32>
    %22 = vector.shape_cast %18 : vector<16x16xf32> to vector<1x16x16xf32>
    tpu.vector_store %arg4[%19, %c0_17, %c0_18], %22 {strides = array<i32>} : memref<4x16x16xf32, #tpu.memory_space<vmem>>, vector<1x16x16xf32>,
    %c2_i32 = arith.constant 2 : i32
    %23 = arith.index_cast %c2_i32 : i32 to index
    %c0_19 = arith.constant 0 : index
    %c0_20 = arith.constant 0 : index
    %24 = vector.load %arg5[%23, %c0_19, %c0_20] : memref<4x16x16xf32, #tpu.memory_space<vmem>>, vector<1x16x16xf32>
    %25 = vector.shape_cast %24 : vector<1x16x16xf32> to vector<16x16xf32>
    %cst_21 = arith.constant dense<0.000000e+00> : vector<16x16xf32>
    %26 = tpu.matmul %6, %25, %cst_21 {dimension_numbers = #tpu.dot_dimension_numbers<[1], [0], [0], [1], [0, 0, 1, 1], [], []>} : vector<16x16xf32>, vector<16x16xf32>, vector<16x16xf32> -> vector<16x16xf32>
    %27 = arith.index_cast %c2_i32 : i32 to index
    %c0_22 = arith.constant 0 : index
    %c0_23 = arith.constant 0 : index
    %28 = vector.load %arg4[%27, %c0_22, %c0_23] : memref<4x16x16xf32, #tpu.memory_space<vmem>>, vector<1x16x16xf32>
    %29 = vector.shape_cast %28 : vector<1x16x16xf32> to vector<16x16xf32>
    %30 = vector.shape_cast %26 : vector<16x16xf32> to vector<1x16x16xf32>
    tpu.vector_store %arg4[%27, %c0_22, %c0_23], %30 {strides = array<i32>} : memref<4x16x16xf32, #tpu.memory_space<vmem>>, vector<1x16x16xf32>,
    %c3_i32 = arith.constant 3 : i32
    %31 = arith.index_cast %c3_i32 : i32 to index
    %c0_24 = arith.constant 0 : index
    %c0_25 = arith.constant 0 : index
    %32 = vector.load %arg5[%31, %c0_24, %c0_25] : memref<4x16x16xf32, #tpu.memory_space<vmem>>, vector<1x16x16xf32>
    %33 = vector.shape_cast %32 : vector<1x16x16xf32> to vector<16x16xf32>
    %cst_26 = arith.constant dense<0.000000e+00> : vector<16x16xf32>
    %34 = tpu.matmul %6, %33, %cst_26 {dimension_numbers = #tpu.dot_dimension_numbers<[1], [0], [0], [1], [0, 0, 1, 1], [], []>} : vector<16x16xf32>, vector<16x16xf32>, vector<16x16xf32> -> vector<16x16xf32>
    %35 = arith.index_cast %c3_i32 : i32 to index
    %c0_27 = arith.constant 0 : index
    %c0_28 = arith.constant 0 : index
    %36 = vector.load %arg4[%35, %c0_27, %c0_28] : memref<4x16x16xf32, #tpu.memory_space<vmem>>, vector<1x16x16xf32>
    %37 = vector.shape_cast %36 : vector<1x16x16xf32> to vector<16x16xf32>
    %38 = vector.shape_cast %34 : vector<16x16xf32> to vector<1x16x16xf32>
    tpu.vector_store %arg4[%35, %c0_27, %c0_28], %38 {strides = array<i32>} : memref<4x16x16xf32, #tpu.memory_space<vmem>>, vector<1x16x16xf32>,
    %c4_i32 = arith.constant 4 : i32
    return
  }
  func.func @transform_0(%arg0: i32) -> (i32, i32, i32) {
    %c0_i32 = arith.constant 0 : i32
    %c0_i32_0 = arith.constant 0 : i32
    %c0_i32_1 = arith.constant 0 : i32
    return %arg0, %c0_i32, %c0_i32_0 : i32, i32, i32
  }
  func.func @transform_1(%arg0: i32) -> (i32, i32) {
    %c0_i32 = arith.constant 0 : i32
    %c0_i32_0 = arith.constant 0 : i32
    %c0_i32_1 = arith.constant 0 : i32
    return %c0_i32, %c0_i32_0 : i32, i32
  }
  func.func @transform_2(%arg0: i32) -> (i32, i32) {
    %c0_i32 = arith.constant 0 : i32
    %c0_i32_0 = arith.constant 0 : i32
    %c0_i32_1 = arith.constant 0 : i32
    return %c0_i32, %c0_i32_0 : i32, i32
  }
  func.func @transform_3(%arg0: i32) -> (i32, i32, i32) {
    %c0_i32 = arith.constant 0 : i32
    %c0_i32_0 = arith.constant 0 : i32
    %c0_i32_1 = arith.constant 0 : i32
    return %arg0, %c0_i32, %c0_i32_0 : i32, i32, i32
  }
}

</mosaic_0001>

<bundles_post_ra>
// kernel: tpu_custom_call.1
= control target key start
LH: loop header
LB: loop body
LE: loop exit
PB: predicated region body
PF: predicated region fallthrough
CT: control target
= control target key end

     0   :  { %8 = vsyncpa [#allocation4], 0  ;;  %s1037_s0 = inlined_call_operand.hbm [shape: f32[8,16,16], index: 0, kind: input, shape index: {}]   ;;  %s1038_s1 = inlined_call_operand.hbm [shape: f32[16,16], index: 1, kind: input, shape index: {}]   ;;  %s1039_s2 = inlined_call_operand.hbm [shape: f32[16,16], index: 2, kind: input, shape index: {}]   ;;  %s1040_s3 = inlined_call_operand.hbm [shape: f32[8,16,16], index: 3, kind: output, shape index: {}]  }
   0x1   :  { %10 = vsyncpa [#allocation4 + $0x1], 0 }
   0x2   :  { %11 = vsyncpa [#allocation7], 0 }
   0x3   :  { %12 = vsyncpa [#allocation5], 0 }
   0x4   :  { %14 = vsyncpa [#allocation5 + $0x1], 0  ;;  %s851_s12 = smov 0   ;;  %s853_s13 = smov 0  }
   0x5   :  { %s855_s14 = smov 0   ;;  %s857_s15 = smov 0  }
   0x6 LB: > { %s872_s16 = sadd.s32 4294967295, %s823_s15   ;;  %s542_s17 = sadd.s32 4294967294, %s823_s15   ;;  %s823_s15 = sphi %s857_s15, %s1050_s15   ;;  %s819_s14 = sphi %s855_s14, %s1049_s14   ;;  %s815_s13 = sphi %s853_s13, %s1048_s13   ;;  %s811_s12 = sphi %s851_s12, %s1047_s12  }
   0x7   : > { %p40_p0 = scmp.ne.s32.totalorder %s815_s13, %s811_s12  ;;  %p41_p1 = scmp.eq.s32.totalorder %s872_s16, 0 }
   0x8   : > { %p106_p2 = scmp.eq.s32.totalorder %s872_s16, 1  ;;  %p112_p3 = scmp.eq.s32.totalorder %s542_s17, 1 }
   0x9   : > { %p881_p4 = por %p41_p1, %p40_p0  ;;  %p543_p5 = scmp.ge.s32.totalorder %s823_s15, 1 }
   0xa   : > { %p886_p6 = por %p112_p3, %p40_p0  ;;  %p119_p7 = scmp.lt.s32.totalorder %s823_s15, 3 }
   0xb   : > { %s130_s22 = sshll.u32 %s1038_s1, 4  ;;  %s825_s24 = smov [#allocation6]   ;;  %s131_s22 = int_to_ptr.hbm [resolvable:$true] %s130_s22 }
   0xc   : > { %p894_p8 = pnand %p543_p5, %p119_p7  ;;  %s132_s25 = sshll.u32 %s825_s24, 4  ;;  %s133_s25 = int_to_ptr.vmem [resolvable:$true] %s132_s25 }
   0xd   : > { %s144_s28 = sshll.u32 %s1039_s2, 4  ;;  %s826_s29 = smov 128   ;;  %s145_s28 = int_to_ptr.hbm [resolvable:$true] %s144_s28 }
   0xe   : > { %p604_p9 = pneg %p894_p8  ;;  %s827_s30 = smov 8  }
   0xf   : > { %s828_s4 = smov [#allocation8]   ;;  %s913_s6 = sadd.s32 1, %s823_s15  }
  0x10   : > { %p605_p10 = pnand %p604_p9, %p41_p1  ;;  %s146_s5 = sshll.u32 %s828_s4, 4  ;;  %s147_s5 = int_to_ptr.vmem [resolvable:$true] %s146_s5 }
  0x11   : > { %s27_s7 = sadd.s32 1, %s819_s14  ;;  %s24_s8 = ssub.s32 %s823_s15, %s913_s6 }
  0x12   : > { %607 = dma.hbm_to_vmem [thread:$0]  (!%p605_p10), %s131_s22, 256, %s133_s25, [#allocation7], %s826_s29, %s826_s29, %s827_s30  }
  0x13   : > { %610 = dma.hbm_to_vmem [thread:$0]  (!%p605_p10), %s145_s28, 256, %s147_s5, [#allocation7], %s826_s29, %s826_s29, %s827_s30  }
  0x14   : > { %p34_p12 = scmp.ne.s32.totalorder %s819_s14, %s815_s13  ;;  %p25_p13 = scmp.eq.s32.totalorder %s24_s8, 0 }
  0x15   : > { %p35_p0 = scmp.eq.s32.totalorder %s823_s15, 0  ;;  %p621_p5 = scmp.lt.s32.totalorder %s823_s15, 2 }
  0x16   : > { %p923_p3 = por %p106_p2, %p34_p12  ;;  %s160_s11 = sand.u32 1, %s819_s14  }
  0x17   : > { %s929_s10 = scalar_select %p25_p13, %s819_s14, %s27_s7  }
  0x18   : > { %p36_p7 = por %p35_p0, %p34_p12  ;;  %s547_s17 = sshll.u32 %s160_s11, 6 }
  0x19   : > { %s585_s20 = sshll.u32 %s823_s15, 6  ;;  %s164_s25 = scalar_lea.vmem [#allocation3], %s547_s17 }
  0x1a   : > { %s170_s24 = scalar_lea.hbm %s1037_s0, %s585_s20  ;;  %s173_s26 = sshll.u32 %s164_s25, 4  ;;  %s174_s26 = int_to_ptr.vmem [resolvable:$true] %s173_s26 }
  0x1b   : > { %s171_s27 = sshll.u32 %s170_s24, 4  ;;  %p936_p2 = pnand %p621_p5, %p36_p7  ;;  %s172_s27 = int_to_ptr.hbm [resolvable:$true] %s171_s27 }
  0x1c   : > { %s161_s4 = scalar_lea.sflag [#allocation4], %s160_s11  ;;  %s723_s5 = sshra.s32 %s172_s27, 4  ;;  %s724_s5 = int_to_ptr.hbm [resolvable:$true] %s723_s5 }
  0x1d   : > { %s725_s7 = scalar_lea.hbm %s724_s5, 64  ;;  %p727_p10 = pneg %p936_p2 }
  0x1e   : > { %p726_p9 = scmp.ne.s32.totalorder %s724_s5, %s725_s7  ;;  %s730_s20 = scalar_lea.hbm %s1037_s0, 128 }
  0x1f   : > { %p731_p0 = scmp.lt.s32.totalorder %s724_s5, %s1037_s0  ;;  %p732_p5 = scmp.lt.s32.totalorder %s730_s20, %s725_s7 }
  0x20   : > { %p728_p12 = pnand %p727_p10, %p726_p9 }
  0x21   : > { %p733_p7 = por %p732_p5, %p731_p0 }
  0x22   : > { %p729_p13 = pneg %p728_p12 }
  0x24   : > { %p734_p11 = pnand %p733_p7, %p729_p13 }
  0x26   : > { %737 = shalt.err (!%p734_p11)
}
  0x27   : > { %614 = dma.hbm_to_vmem [thread:$0]  (!%p936_p2), %s172_s27, 1024, %s174_s26, %s161_s4, %s826_s29, %s826_s29, %s827_s30  }
  0x28   : > { %185 = sbr.rel (%p894_p8) target bundleno = 357 (0x165), region = 32  ;;  %s956_s11 = sand.u32 (!%p894_p8), 1, %s815_s13  }
  0x29   : > { %s552_s24 = sshll.u32 (!%p894_p8), %s956_s11, 6  ;;  %s188_s25 = scalar_lea.sflag (!%p894_p8), [#allocation4], %s956_s11 }
  0x2a   : > { %s191_s5 = scalar_lea.vmem (!%p894_p8), [#allocation3], %s552_s24 }
  0x2d   : > { %798 = dma.done.wait (%p881_p4), %s188_s25, 1024  }
  0x2e   : > { %800 = vsyncadd (%p881_p4), %s188_s25, 4294966272 }
  0x2f   : > { %802 = dma.done.wait (%p41_p1), [#allocation7], 512  }
  0x30   : > { %804 = vsyncadd (%p41_p1), [#allocation7], 4294966784  ;;  %v236_v0 = vld [vmem:[#allocation8 + $0x8] sm:$0xff]  ;;  %v235_v1 = vld [vmem:[#allocation8] sm:$0xff]  ;;  %vm237_vm0 = vcmask 130048   ;;  %s224_s18 = scalar_lea.vmem [#allocation9], %s552_s24 }
  0x31   : > { %276 = vmatpush.msra.mxu0 %v236_v0  ;;  %588 = vmatpush.msra.mxu2 %v236_v0  ;;  %v227_v2 = vld [vmem:[%s191_s5] sm:$0xff]  ;;  %v233_v4 = vld [vmem:[%s191_s5 + $0x30] sm:$0xff]  ;;  %v228_v5 = vld [vmem:[%s191_s5 + $0x8] sm:$0xff]  ;;  %s587_s23 = sshll.u32 %s872_s16, 6  ;;  %s447_s27 = sshll.u32 %s224_s18, 4  ;;  %s448_s27 = int_to_ptr.vmem [resolvable:$true] %s447_s27 }
  0x32   : > { %v231_v3 = vld [vmem:[%s191_s5 + $0x20] sm:$0xff]  ;;  %589 = vmatpush.msra.mxu3 %v236_v0  ;;  %v232_v6 = vld [vmem:[%s191_s5 + $0x28] sm:$0xff]  ;;  %v234_v7 = vld [vmem:[%s191_s5 + $0x38] sm:$0xff]  ;;  %s446_s26 = scalar_lea.hbm %s1040_s3, %s587_s23  ;;  %s434_s16 = scalar_lea.sflag [#allocation5], %s956_s11 }
  0x33   : > { %277 = vmatpush.msra.mxu0 %v235_v1  ;;  %590 = vmatpush.msra.mxu2 %v235_v1  ;;  %v229_v8 = vld [vmem:[%s191_s5 + $0x10] sm:$0xff]  ;;  %v230_v9 = vld [vmem:[%s191_s5 + $0x18] sm:$0xff]  ;;  %v311_v18 = vld [vmem:[#allocation6] sm:$0xff]  ;;  %s449_s28 = sshll.u32 %s446_s26, 4  ;;  %s773_s20 = scalar_lea.hbm %s1040_s3, 128  ;;  %s450_s28 = int_to_ptr.hbm [resolvable:$true] %s449_s28 }
  0x34   : > { %556 = vmatmul.msk.f32.vlgmr.msra.gmra.mxu0 %vm237_vm0, %v227_v2  ;;  %560 = vmatmul.msk.f32.vlgmr.msra.gmra.mxu2 %vm237_vm0, %v231_v3  ;;  %v312_v25 = vld [vmem:[#allocation6 + $0x8] sm:$0xff]  ;;  %s767_s4 = sshra.s32 %s450_s28, 4  ;;  %s768_s4 = int_to_ptr.hbm [resolvable:$true] %s767_s4 }
  0x35   : > { %591 = vmatpush.msra.mxu3 %v235_v1  ;;  %s769_s7 = scalar_lea.hbm %s768_s4, 64  ;;  %p774_p11 = scmp.lt.s32.totalorder %s768_s4, %s1040_s3 }
  0x36   : > { %562 = vmatmul.msk.f32.vlgmr.msra.gmra.mxu3 %vm237_vm0, %v233_v4  ;;  %p770_p1 = scmp.ne.s32.totalorder %s768_s4, %s769_s7  ;;  %p775_p2 = scmp.lt.s32.totalorder %s773_s20, %s769_s7 }
  0x38   : > { %p771_p4 = pnand %p770_p1, %p923_p3  ;;  %p776_p9 = por %p775_p2, %p774_p11 }
  0x3a   : > { %p772_p8 = pneg %p771_p4 }
  0x3c   : > { %557 = vmatmul.msk.f32.gmra.mxu0 %vm237_vm0, %v228_v5  ;;  %561 = vmatmul.msk.f32.gmra.mxu2 %vm237_vm0, %v232_v6  ;;  %p777_p10 = pnand %p776_p9, %p772_p8 }
  0x3e   : > { %563 = vmatmul.msk.f32.gmra.mxu3 %vm237_vm0, %v234_v7 }
  0x44   : > { %558 = vmatmul.msk.f32.gmra.mxu0 %vm237_vm0, %v229_v8 }
  0x4c   : > { %559 = vmatmul.msk.f32.gmra.mxu0 %vm237_vm0, %v230_v9 }
  0xb1   : > { %v279_v10 = vpop.f32.mrf.mxu0 }
  0xb2   : > { %303 = vst.msk [vmem:[#allocation2] sm:$0xff] %vm237_vm0, %v279_v10 }
  0xb7   : > { %v291_v11 = vpop.f32.mrf.mxu2 }
  0xb8   : > { %307 = vst.msk [vmem:[#allocation2 + $0x20] sm:$0xff] %vm237_vm0, %v291_v11 }
  0xb9   : > { %v282_v12 = vpop.f32.mrf.mxu0  ;;  %v297_v13 = vpop.f32.mrf.mxu3  ;;  %v313_v19 = vld [vmem:[#allocation2] sm:$0xff] }
  0xba   : > { %304 = vst.msk [vmem:[#allocation2 + $0x8] sm:$0xff] %vm237_vm0, %v282_v12 }
  0xbb   : > { %309 = vst.msk [vmem:[#allocation2 + $0x30] sm:$0xff] %vm237_vm0, %v297_v13 }
  0xbf   : > { %v294_v14 = vpop.f32.mrf.mxu2  ;;  %v376_v21 = vld [vmem:[#allocation2 + $0x20] sm:$0xff] }
  0xc0   : > { %308 = vst.msk [vmem:[#allocation2 + $0x28] sm:$0xff] %vm237_vm0, %v294_v14 }
  0xc1   : > { %v285_v15 = vpop.f32.mrf.mxu0  ;;  %v314_v16 = vld [vmem:[#allocation2 + $0x8] sm:$0xff]  ;;  %v300_v17 = vpop.f32.mrf.mxu3 }
  0xc2   : > { %305 = vst.msk [vmem:[#allocation2 + $0x10] sm:$0xff] %vm237_vm0, %v285_v15  ;;  %335 = vmatpush.msra.mxu1 %v314_v16  ;;  %v405_v24 = vld [vmem:[#allocation2 + $0x30] sm:$0xff] }
  0xc3   : > { %310 = vst.msk [vmem:[#allocation2 + $0x38] sm:$0xff] %vm237_vm0, %v300_v17 }
  0xc4   : > { %336 = vmatpush.msra.mxu1 %v313_v19 }
  0xc5   : > { %564 = vmatmul.msk.f32.vlgmr.msra.gmra.mxu1 %vm237_vm0, %v311_v18 }
  0xc7   : > { %v377_v20 = vld [vmem:[#allocation2 + $0x28] sm:$0xff] }
  0xc8   : > { %392 = vmatpush.msrb.mxu3 %v377_v20 }
  0xc9   : > { %v288_v22 = vpop.f32.mrf.mxu0  ;;  %v347_v27 = vld [vmem:[#allocation2 + $0x10] sm:$0xff] }
  0xca   : > { %306 = vst.msk [vmem:[#allocation2 + $0x18] sm:$0xff] %vm237_vm0, %v288_v22  ;;  %393 = vmatpush.msrb.mxu3 %v376_v21  ;;  %v406_v23 = vld [vmem:[#allocation2 + $0x38] sm:$0xff] }
  0xcb   : > { %421 = vmatpush.msrb.mxu1 %v406_v23  ;;  %570 = vmatmul.msk.f32.vlgmr.msrb.gmra.mxu3 %vm237_vm0, %v311_v18 }
  0xcd   : > { %422 = vmatpush.msrb.mxu1 %v405_v24 }
  0xce   : > { %565 = vmatmul.msk.f32.gmra.mxu1 %vm237_vm0, %v312_v25 }
  0xd1   : > { %v348_v26 = vld [vmem:[#allocation2 + $0x18] sm:$0xff] }
  0xd2   : > { %363 = vmatpush.msrb.mxu2 %v348_v26 }
  0xd3   : > { %571 = vmatmul.msk.f32.gmra.mxu3 %vm237_vm0, %v312_v25 }
  0xd4   : > { %364 = vmatpush.msrb.mxu2 %v347_v27 }
  0xd5   : > { %566 = vmatmul.msk.f32.vlgmr.msrb.gmra.mxu2 %vm237_vm0, %v311_v18 }
  0xd6   : > { %574 = vmatmul.msk.f32.vlgmr.msrb.gmra.mxu1 %vm237_vm0, %v311_v18 }
  0xdd   : > { %567 = vmatmul.msk.f32.gmra.mxu2 %vm237_vm0, %v312_v25 }
  0xde   : > { %575 = vmatmul.msk.f32.gmra.mxu1 %vm237_vm0, %v312_v25 }
 0x142   : > { %v338_v28 = vpop.f32.mrf.mxu1 }
 0x143   : > { %344 = vst.msk [vmem:[%s224_s18] sm:$0xff] %vm237_vm0, %v338_v28 }
 0x14b   : > { %v341_v29 = vpop.f32.mrf.mxu1 }
 0x14c   : > { %345 = vst.msk [vmem:[%s224_s18 + $0x8] sm:$0xff] %vm237_vm0, %v341_v29 }
 0x14e   : > { %v395_v30 = vpop.f32.mrf.mxu3 }
 0x14f   : > { %572 = vst.msk [vmem:[%s224_s18 + $0x20] sm:$0xff] %vm237_vm0, %v395_v30 }
 0x153   : > { %v424_v31 = vpop.f32.mrf.mxu1 }
 0x154   : > { %576 = vst.msk [vmem:[%s224_s18 + $0x30] sm:$0xff] %vm237_vm0, %v424_v31 }
 0x156   : > { %v398_v32 = vpop.f32.mrf.mxu3 }
 0x157   : > { %573 = vst.msk [vmem:[%s224_s18 + $0x28] sm:$0xff] %vm237_vm0, %v398_v32 }
 0x158   : > { %v366_v33 = vpop.f32.mrf.mxu2 }
 0x159   : > { %568 = vst.msk [vmem:[%s224_s18 + $0x10] sm:$0xff] %vm237_vm0, %v366_v33 }
 0x15b   : > { %v427_v34 = vpop.f32.mrf.mxu1 }
 0x15c   : > { %577 = vst.msk [vmem:[%s224_s18 + $0x38] sm:$0xff] %vm237_vm0, %v427_v34 }
 0x160   : > { %v369_v35 = vpop.f32.mrf.mxu2 }
 0x161   : > { %569 = vst.msk [vmem:[%s224_s18 + $0x18] sm:$0xff] %vm237_vm0, %v369_v35 }
 0x162   : > { %780 = shalt.err (!%p777_p10)
}
 0x163   : > { %s829_s11 = smov 128   ;;  %s830_s24 = smov 8  }
 0x164   : > { %602 = dma.vmem_to_hbm [thread:$0]  (%p923_p3), %s448_s27, 1024, %s450_s28, %s434_s16, %s829_s11, %s829_s11, %s830_s24  }
 0x165 PF: > { %s464_s25 = sand.u32 1, %s811_s12   ;;  %p1046_p12 = scmp.ge.s32.totalorder %s823_s15, 2 }
 0x166   : > { %s465_s5 = scalar_lea.sflag [#allocation5], %s464_s25 }
 0x167   : > { %p616_p13 = pnand %p1046_p12, %p886_p6 }
 0x169   : > { %p617_p0 = pneg %p616_p13 }
 0x16b   : > { %806 = dma.done.wait (%p617_p0), %s465_s5, 1024  }
 0x16c   : > { %808 = vsyncadd (%p617_p0), %s465_s5, 4294966272  ;;  %p17_p5 = scmp.ge.s32.totalorder %s913_s6, 4   ;;  %s1047_s12 = smov %s815_s13 }
 0x16d   : > { %s1048_s13 = smov %s819_s14  ;;  %s1049_s14 = smov %s929_s10 }
 0x16e   : > { %s1050_s15 = smov %s913_s6  ;;  %19 = sbr.rel (!%p17_p5) target bundleno = 6 (0x6), region = 91 }
 0x173   :  { %471 = vsyncpa [#allocation4], 1 }
 0x174   :  { %473 = vsyncpa [#allocation4 + $0x1], 1 }
 0x175   :  { %474 = vsyncpa [#allocation7], 1 }
 0x176   :  { %475 = vsyncpa [#allocation5], 1 }
 0x177   :  { %477 = vsyncpa [#allocation5 + $0x1], 1 }

</bundles_post_ra>
